<compile_context>
chip_gen: v5e
topology: v5e:2x2
jax: 0.10.0
libtpu: 0.0.40
codegen_flags: <defaults>
</compile_context>

<pallas_src>
import math
import jax
import jax.numpy as jnp
from jax.experimental import pallas as pl
from jax.experimental.pallas import tpu as pltpu  # noqa: F401  (TPU backend)


def _lstm_kernel(xh_ref, c_ref, w_ref, b_ref, out_ref):
    """xh: (B, F+H) f32, c: (B, H) f32, w: (F+H, 4H) bf16, b: (1, 4H) f32.
    out: (B, 2H) f32 laid out as [new_hidden | new_context]."""
    H = c_ref.shape[-1]

    # One MXU dot: bf16 inputs, f32 accumulation.
    xh = xh_ref[...].astype(jnp.bfloat16)
    gates = jnp.dot(xh, w_ref[...], preferred_element_type=jnp.float32)
    gates = gates + b_ref[...]                       # (B, 4H) f32

    # Lane layout of `gates`: [forget | input | output | cstate], each H wide.
    # sigmoid on the first 3H lanes, tanh on the last H lanes — single
    # full-vreg activation pass selected by a lane-index mask.
    lane = jax.lax.broadcasted_iota(jnp.int32, gates.shape, dimension=1)
    act = jnp.where(lane < 3 * H, jax.nn.sigmoid(gates), jnp.tanh(gates))

    forget_t = act[:, 0 * H:1 * H]
    input_t = act[:, 1 * H:2 * H]
    output_t = act[:, 2 * H:3 * H]
    cell_state_t = act[:, 3 * H:4 * H]

    c_prev = c_ref[...]
    context_t = forget_t * c_prev + input_t * cell_state_t
    new_hidden = output_t * jnp.tanh(context_t)

    # Single lane-packed output: [new_hidden | new_context].
    out_ref[:, 0:H] = new_hidden.astype(out_ref.dtype)
    out_ref[:, H:2 * H] = context_t.astype(out_ref.dtype)


def pack_lstm_params(params):
    """One-time fusion of the four PyTorch-layout (H, F+H) gate weights into
    W_all: (F+H, 4H) bf16 and b_all: (1, 4H) f32. Call OUTSIDE the per-step
    (per-timestep) path."""
    gate_order = ("w_forget", "w_input", "w_output", "w_cstate")
    w_all = jnp.concatenate([params[g]["w"].T for g in gate_order], axis=1)
    b_all = jnp.concatenate([params[g]["b"] for g in gate_order], axis=0)
    return w_all.astype(jnp.bfloat16), b_all[None, :].astype(jnp.float32)


def lstm_forward(x, hidden, context, w_all, b_all):
    """Single LSTM-cell step. Returns (new_hidden, context_t), both f32."""
    B, F = x.shape
    H = hidden.shape[-1]

    # cat([x, h], -1) done lane-dense in XLA (cheap), not on-chip.
    xh = jnp.concatenate([x, hidden], axis=-1)       # (B, F+H)

    out = pl.pallas_call(
        _lstm_kernel,
        out_shape=jax.ShapeDtypeStruct((B, 2 * H), jnp.float32),
        # Problem is tiny: single grid point, every operand whole in VMEM,
        # only 4 input DMAs + 1 output DMA.
    )(xh, context, w_all, b_all)

    return out[:, :H], out[:, H:]


def init_linear(key, in_features, out_features):
    """Deterministic PyTorch-style uniform init for nn.Linear."""
    kw, kb = jax.random.split(key)
    bound = 1.0 / math.sqrt(in_features)
    w = jax.random.uniform(kw, (out_features, in_features),
                           minval=-bound, maxval=bound, dtype=jnp.float32)
    b = jax.random.uniform(kb, (out_features,),
                           minval=-bound, maxval=bound, dtype=jnp.float32)
    return {"w": w, "b": b}


def reference_lstm(x, hidden, context, params):
    cell_input = jnp.concatenate([x, hidden], axis=-1)

    def lin(p):
        return cell_input @ p["w"].T + p["b"]

    forget_t = jax.nn.sigmoid(lin(params["w_forget"]))
    input_t = jax.nn.sigmoid(lin(params["w_input"]))
    output_t = jax.nn.sigmoid(lin(params["w_output"]))
    cell_state_t = jnp.tanh(lin(params["w_cstate"]))
    context_t = forget_t * context + input_t * cell_state_t
    new_hidden = output_t * jnp.tanh(context_t)
    return new_hidden, context_t


if __name__ == "__main__":
    B = 8           # batch
    F = 32          # in_features
    H = 32          # hidden_features  (fused gate width 4H = 128 lanes)

    key = jax.random.PRNGKey(0)
    k_x, k_h, k_c, k_f, k_i, k_o, k_s = jax.random.split(key, 7)

    x = jax.random.normal(k_x, (B, F), dtype=jnp.float32)
    hidden = jax.random.normal(k_h, (B, H), dtype=jnp.float32)
    context = jax.random.normal(k_c, (B, H), dtype=jnp.float32)

    lstm_in = F + H
    params = {
        "w_input": init_linear(k_i, lstm_in, H),
        "w_forget": init_linear(k_f, lstm_in, H),
        "w_output": init_linear(k_o, lstm_in, H),
        "w_cstate": init_linear(k_s, lstm_in, H),
    }

    # Pack/fuse weights ONCE, outside the (potentially per-timestep) step fn.
    w_all, b_all = pack_lstm_params(params)
    w_all, b_all = jax.device_put(w_all), jax.device_put(b_all)

    step = jax.jit(lstm_forward)
    new_h, new_c = step(x, hidden, context, w_all, b_all)
    jax.block_until_ready((new_h, new_c))

    ref_h, ref_c = reference_lstm(x, hidden, context, params)
    # bf16 MXU operands (f32 accumulate) -> slightly looser tolerance than f32.
    assert jnp.allclose(new_h, ref_h, atol=2e-2, rtol=2e-2), "hidden mismatch"
    assert jnp.allclose(new_c, ref_c, atol=2e-2, rtol=2e-2), "context mismatch"

    print("KERNEL_OK")
</pallas_src>

<mosaic_0001>
module attributes {stable_mosaic.version = 11 : i64} {
  func.func @_lstm_kernel(%arg0: memref<8x64xf32, #tpu.memory_space<vmem>>, %arg1: memref<8x32xf32, #tpu.memory_space<vmem>>, %arg2: memref<64x128xbf16, #tpu.memory_space<vmem>>, %arg3: memref<1x128xf32, #tpu.memory_space<vmem>>, %arg4: memref<8x64xf32, #tpu.memory_space<vmem>>) attributes {dimension_semantics = [], scalar_prefetch = 0 : i64, scratch_operands = 0 : i64, tpu.core_type = #tpu.core_type<tc>} {
    %c0 = arith.constant 0 : index
    %c0_0 = arith.constant 0 : index
    %0 = vector.load %arg0[%c0, %c0_0] : memref<8x64xf32, #tpu.memory_space<vmem>>, vector<8x64xf32>
    %1 = arith.truncf %0 : vector<8x64xf32> to vector<8x64xbf16>
    %c0_1 = arith.constant 0 : index
    %c0_2 = arith.constant 0 : index
    %2 = vector.load %arg2[%c0_1, %c0_2] : memref<64x128xbf16, #tpu.memory_space<vmem>>, vector<64x128xbf16>
    %cst = arith.constant dense<0.000000e+00> : vector<8x128xf32>
    %3 = tpu.matmul %1, %2, %cst {dimension_numbers = #tpu.dot_dimension_numbers<[1], [0], [0], [1], [0, 0, 1, 1], [], []>} : vector<8x64xbf16>, vector<64x128xbf16>, vector<8x128xf32> -> vector<8x128xf32>
    %c0_3 = arith.constant 0 : index
    %c0_4 = arith.constant 0 : index
    %4 = vector.load %arg3[%c0_3, %c0_4] : memref<1x128xf32, #tpu.memory_space<vmem>>, vector<1x128xf32>
    %5 = vector.broadcast %4 : vector<1x128xf32> to vector<8x128xf32>
    %6 = arith.addf %3, %5 : vector<8x128xf32>
    %7 = tpu.iota {dimensions = array<i32: 1>} : vector<8x128xi32>
    %c96_i32 = arith.constant 96 : i32
    %8 = vector.broadcast %c96_i32 : i32 to vector<8x128xi32>
    %9 = arith.cmpi slt, %7, %8 : vector<8x128xi32>
    %10 = arith.negf %6 : vector<8x128xf32>
    %11 = math.exp %10 : vector<8x128xf32>
    %cst_5 = arith.constant 1.000000e+00 : f32
    %12 = vector.broadcast %cst_5 : f32 to vector<8x128xf32>
    %13 = arith.addf %12, %11 : vector<8x128xf32>
    %14 = arith.divf %12, %13 : vector<8x128xf32>
    %15 = math.tanh %6 : vector<8x128xf32>
    %16 = arith.select %9, %14, %15 : vector<8x128xi1>, vector<8x128xf32>
    %17 = vector.extract_strided_slice %16 {offsets = [0, 0], sizes = [8, 32], strides = [1, 1]} : vector<8x128xf32> to vector<8x32xf32>
    %18 = vector.extract_strided_slice %16 {offsets = [0, 32], sizes = [8, 32], strides = [1, 1]} : vector<8x128xf32> to vector<8x32xf32>
    %19 = vector.extract_strided_slice %16 {offsets = [0, 64], sizes = [8, 32], strides = [1, 1]} : vector<8x128xf32> to vector<8x32xf32>
    %20 = vector.extract_strided_slice %16 {offsets = [0, 96], sizes = [8, 32], strides = [1, 1]} : vector<8x128xf32> to vector<8x32xf32>
    %c0_6 = arith.constant 0 : index
    %c0_7 = arith.constant 0 : index
    %21 = vector.load %arg1[%c0_6, %c0_7] : memref<8x32xf32, #tpu.memory_space<vmem>>, vector<8x32xf32>
    %22 = arith.mulf %17, %21 : vector<8x32xf32>
    %23 = arith.mulf %18, %20 : vector<8x32xf32>
    %24 = arith.addf %22, %23 : vector<8x32xf32>
    %25 = math.tanh %24 : vector<8x32xf32>
    %26 = arith.mulf %19, %25 : vector<8x32xf32>
    %c0_8 = arith.constant 0 : index
    %c0_9 = arith.constant 0 : index
    %27 = vector.load %arg4[%c0_8, %c0_9] : memref<8x64xf32, #tpu.memory_space<vmem>>, vector<8x32xf32>
    tpu.vector_store %arg4[%c0_8, %c0_9], %26 {strides = array<i32>} : memref<8x64xf32, #tpu.memory_space<vmem>>, vector<8x32xf32>,
    %c0_10 = arith.constant 0 : index
    %c32 = arith.constant 32 : index
    %28 = vector.load %arg4[%c0_10, %c32] : memref<8x64xf32, #tpu.memory_space<vmem>>, vector<8x32xf32>
    tpu.vector_store %arg4[%c0_10, %c32], %24 {strides = array<i32>} : memref<8x64xf32, #tpu.memory_space<vmem>>, vector<8x32xf32>,
    return
  }
}

</mosaic_0001>

<bundles_post_ra>
// kernel: lstm_forward.1
= control target key start
LH: loop header
LB: loop body
LE: loop exit
PB: predicated region body
PF: predicated region fallthrough
CT: control target
= control target key end

     0   :  { %9 = vsyncpa [#allocation3], 0  ;;  %s210_s18 = smov [#allocation2]   ;;  %s211_s20 = smov 64   ;;  %s263_s0 = inlined_call_operand.vmem [shape: f32[8,64], index: 0, kind: input, shape index: {}]   ;;  %s264_s1 = inlined_call_operand.vmem [shape: f32[8,32], index: 1, kind: input, shape index: {}]   ;;  %s265_s2 = inlined_call_operand.hbm [shape: bf16[64,128], index: 2, kind: input, shape index: {}]   ;;  %s266_s3 = inlined_call_operand.vmem [shape: f32[1,128], index: 3, kind: input, shape index: {}]   ;;  %s267_s4 = inlined_call_operand.vmem [shape: f32[8,64], index: 4, kind: output, shape index: {}]  }
   0x1   :  { %s18_s17 = sshll.u32 %s265_s2, 4  ;;  %s20_s19 = sshll.u32 %s210_s18, 4  ;;  %s19_s17 = int_to_ptr.hbm [resolvable:$true] %s18_s17  ;;  %s21_s19 = int_to_ptr.vmem [resolvable:$true] %s20_s19 }
   0x2   :  { %s212_s21 = smov 4  }
   0x3   :  { %26 = dma.hbm_to_vmem [thread:$0]  %s19_s17, 512, %s21_s19, [#allocation3], %s211_s20, %s211_s20, %s212_s21  }
   0x4   :  { %208 = dma.done.wait [#allocation3], 512  }
   0x5   :  { %209 = vsyncadd [#allocation3], 4294966784  ;;  %v169_v0 = vld [vmem:[#allocation2 + $0x18] sm:$0xff]  ;;  %v168_v1 = vld [vmem:[#allocation2 + $0x10] sm:$0xff]  ;;  %vm72_vm0 = vcmask 523264   ;;  %v89_v14 = vlaneseq  ;;  %s214_s26 = smov 32  }
   0x6   :  { %80 = vmatpush.bf16.msra.mxu0 %v169_v0  ;;  %v167_v2 = vld [vmem:[#allocation2 + $0x8] sm:$0xff]  ;;  %v166_v3 = vld [vmem:[#allocation2] sm:$0xff]  ;;  %vm135_vm6 = vcmask 261120   ;;  %vm141_vm7 = vcmask 523520  }
   0x7   :  { %v34_v4 = vld [vmem:[%s263_s0] sm:$0xff]  ;;  %v90_v17 = vand.u32 127, %v89_v14  ;;  %s213_s0 = smov 96  }
   0x8   :  { %v35_v5 = vpack.c.bf16 %v34_v4, %v34_v4  ;;  %v175_v6 = vld [vmem:[%s266_s3] ss:$0 sm:$0xff] }
   0x9   :  { %vm91_vm3 = vcmp.lt.s32.totalorder %v90_v17, 96  ;;  %v113_v29 = vld [vmem:[%s264_s1] sm:$0xff] }
   0xa   :  { %81 = vmatpush.bf16.msra.mxu0 %v168_v1 }
   0xe   :  { %82 = vmatpush.bf16.msra.mxu0 %v167_v2 }
  0x12   :  { %83 = vmatpush.bf16.msra.mxu0 %v166_v3 }
  0x15   :  { %164 = vmatmul.msk.bf16.vlgmr.msra.gmra.mxu0 %vm72_vm0, %v35_v5 }
  0x92   :  { %v85_v7 = vpop.f32.mrf.mxu0 }
  0x93   :  { %v86_v8 = vadd.f32 %v175_v6, %v85_v7 }
  0x95   :  { %v165_v9 = vmul.f32 -1.442695, %v86_v8 }
  0x97   :  { %176 = vpow2.f32 %v165_v9 }
  0x9a   :  { %v87_v10 = vpop.f32.mrf.mxu0 }
  0x9d   :  { %v177_v11 = vpop.eup %176 }
  0x9e   :  { %v95_v12 = vadd.f32 1.0, %v177_v11 }
  0xa0   :  { %178 = vrcp.f32 %v95_v12  ;;  %v107_v18 = vand.u32 2147483648, %v95_v12  ;;  %v105_v20 = vand.u32 2147483647, %v95_v12  ;;  %vm101_vm2 = vweird.f32 %v95_v12 }
  0xa1   :  { %180 = vtanh.f32 %v86_v8 }
  0xa2   :  { %v108_v22 = vor.u32 1.1754944e-38, %v107_v18  ;;  %vm106_vm5 = vcmp.eq.f32.partialorder %v105_v20, 8.507059e+37 }
  0xa6   :  { %v179_v13 = vpop.eup %178 }
  0xa7   :  { %v97_v15 = vmul.f32 %v179_v13, %v95_v12  ;;  %vm102_vm1 = vweird.f32 %v179_v13  ;;  %v181_v24 = vpop.eup %180 }
  0xa8   :  { %vm103_vm4 = vmor %vm101_vm2, %vm102_vm1 }
  0xa9   :  { %v98_v16 = vsub.f32 1.0, %v97_v15 }
  0xab   :  { %v99_v19 = vmul.f32 %v179_v13, %v98_v16 }
  0xad   :  { %v100_v21 = vadd.f32 %v179_v13, %v99_v19 }
  0xaf   :  { %v104_v23 = vsel %vm103_vm4, %v179_v13, %v100_v21 }
  0xb0   :  { %v109_v25 = vsel %vm106_vm5, %v108_v22, %v104_v23 }
  0xb1   :  { %v112_v26 = vsel %vm91_vm3, %v109_v25, %v181_v24 }
  0xb2   :  { %116 = vrot.lane.b32.xlu0 %v112_v26, %s211_s20  ;;  %v114_v30 = vmul.f32 %v113_v29, %v112_v26 }
 0x124   :  { %v117_v27 = vpop.permute.xlu0 %116 }
 0x125   :  { %v119_v28 = vmul.f32 %v117_v27, %v112_v26 }
 0x127   :  { %121 = vrot.lane.b32.xlu0 %v119_v28, %s213_s0 }
 0x199   :  { %v122_v31 = vpop.permute.xlu0 %121 }
 0x19a   :  { %v124_v32 = vadd.f32 %v122_v31, %v114_v30 }
 0x19c   :  { %138 = vrot.lane.b32.xlu2 %v124_v32, %s214_s26  ;;  %182 = vtanh.f32 %v124_v32 }
 0x1a2   :  { %v183_v33 = vpop.eup %182 }
 0x1a3   :  { %127 = vrot.lane.b32.xlu1 %v183_v33, %s211_s20 }
 0x1f6   :  { %v139_v37 = vpop.permute.xlu2 %138 }
 0x215   :  { %v128_v34 = vpop.permute.xlu1 %127 }
 0x216   :  { %v130_v35 = vmul.f32 %v128_v34, %v112_v26 }
 0x218   :  { %132 = vrot.lane.b32.xlu1 %v130_v35, %s211_s20 }
 0x28a   :  { %v133_v36 = vpop.permute.xlu1 %132 }
 0x28b   :  { %136 = vst.msk [vmem:[%s267_s4] sm:$0xff] %vm135_vm6, %v133_v36 }
 0x28c   :  { %142 = vst.msk [vmem:[%s267_s4] sm:$0xff] %vm141_vm7, %v139_v37 }
 0x28d   :  { %147 = vsyncpa [#allocation3], 1 }

</bundles_post_ra>
